<compile_context>
chip_gen: v5e
topology: v5e:2x2
jax: 0.10.0
libtpu: 0.0.40
codegen_flags: <defaults>
</compile_context>

<pallas_src>
import functools

import jax
import jax.numpy as jnp
from jax.experimental import pallas as pl
from jax.experimental.pallas import tpu as pltpu

BN_EPS = 1e-5
LANES = 128
SUBLANES = 8


def _round_up(a, b):
    return (a + b - 1) // b * b


# ----------------------------- kernels --------------------------------------

def _linear_stats_kernel(x_ref, w_ref, sum_ref, sq_ref):
    """Accumulate per-lane sum / sum-of-squares of z = x @ W across row tiles.

    Accumulators keep an 8-sublane axis: the per-tile reduction is a
    sublane-preserving axis-0 sum (pure VPU adds); the final 8 -> 1 reduction
    happens on the tiny host-side array.
    """
    @pl.when(pl.program_id(1) == 0)
    def _init():
        sum_ref[...] = jnp.zeros_like(sum_ref)
        sq_ref[...] = jnp.zeros_like(sq_ref)

    z = jnp.dot(x_ref[...].astype(jnp.bfloat16), w_ref[...],
                preferred_element_type=jnp.float32)
    zr = z.reshape(-1, SUBLANES, z.shape[-1])       # free regroup of (8,128) tiles
    sum_ref[...] += jnp.sum(zr, axis=0)
    sq_ref[...] += jnp.sum(zr * zr, axis=0)


def _linear_affine_relu_kernel(x_ref, w_ref, scale_ref, shift_ref, o_ref, *,
                               residual: bool):
    """o = relu((x @ W) * scale + shift) [+ x]  (BN/bias folded into scale/shift)."""
    x = x_ref[...]
    z = jnp.dot(x.astype(jnp.bfloat16), w_ref[...],
                preferred_element_type=jnp.float32)
    y = jnp.maximum(z * scale_ref[...] + shift_ref[...], 0.0)
    if residual:
        y = y + x
    o_ref[...] = y


# ----------------------------- wrapper ---------------------------------------

def prepare_fc_params(w, b, gamma=None, beta=None, *, use_bn=True):
    """One-time preparation: transpose, pack/pad, bf16-cast the Linear weight."""
    k_out, k_in = w.shape
    residual = (k_in == k_out)
    packed = residual and (LANES % k_in == 0)
    g = LANES // k_in if packed else 1
    kin_l = LANES if packed else _round_up(k_in, LANES)
    kout_l = LANES if packed else _round_up(k_out, LANES)

    w_t = jnp.asarray(w, jnp.float32).T                       # (k_in, k_out)
    if packed:
        # Block-diagonal weight: g independent row-groups share one 128-lane slab.
        w_big = jnp.kron(jnp.eye(g, dtype=jnp.float32), w_t)  # (128, 128)
    else:
        w_big = jnp.pad(w_t, ((0, kin_l - k_in), (0, kout_l - k_out)))

    if gamma is None:
        gamma = jnp.ones((k_out,), jnp.float32)
    if beta is None:
        beta = jnp.zeros((k_out,), jnp.float32)

    return dict(
        w=w_big.astype(jnp.bfloat16),                         # MXU-native operand
        b=jnp.asarray(b, jnp.float32).reshape(k_out),
        gamma=jnp.asarray(gamma, jnp.float32).reshape(k_out),
        beta=jnp.asarray(beta, jnp.float32).reshape(k_out),
        k_in=k_in, k_out=k_out, g=g, kin_l=kin_l, kout_l=kout_l,
        residual=residual, packed=packed, use_bn=use_bn,
    )


def fc_layer_apply(x, params, *, m_tile=512):
    """x: (..., k_in) float32 -> (..., k_out) float32."""
    k_in, k_out = params["k_in"], params["k_out"]
    g, kin_l, kout_l = params["g"], params["kin_l"], params["kout_l"]
    residual, packed = params["residual"], params["packed"]
    use_bn = params["use_bn"]
    w_big = params["w"]

    lead = x.shape[:-1]
    x2d = x.reshape(-1, k_in).astype(jnp.float32)
    m = x2d.shape[0]

    # Row tiling (packed rows when g > 1).  Tiles are multiples of 8 sublanes.
    m_rows = -(-m // g)
    mt = _round_up(min(m_tile, _round_up(m_rows, SUBLANES)), SUBLANES)
    n_tiles = pl.cdiv(m_rows, mt)
    # Split the stats reduction across a leading "parallel" axis so the two
    # TensorCores of a v7x chip can each own half of the tiles.
    n_split = 2 if (use_bn and n_tiles >= 2) else 1
    n_tiles = _round_up(n_tiles, n_split)
    tiles_per_split = n_tiles // n_split
    m_rows_pad = n_tiles * mt

    if packed:
        x_lane = jnp.pad(x2d, ((0, m_rows_pad * g - m), (0, 0)))
        x_lane = x_lane.reshape(m_rows_pad, kin_l)      # free row-major reshape
    else:
        x_lane = jnp.pad(x2d, ((0, m_rows_pad - m), (0, kin_l - k_in)))

    def lane(p):  # (k_out,) -> (1, kout_l) in the output lane layout
        p = jnp.asarray(p, jnp.float32).reshape(-1)
        if packed:
            return jnp.tile(p, (g,)).reshape(1, kout_l)
        return jnp.pad(p, (0, kout_l - k_out)).reshape(1, kout_l)

    flops = 2 * m_rows_pad * kin_l * kout_l

    # ---- pass 1: full-batch per-channel statistics of z = x @ W.
    if use_bn:
        sums, sqs = pl.pallas_call(
            _linear_stats_kernel,
            out_shape=(jax.ShapeDtypeStruct((n_split * SUBLANES, kout_l),
                                            jnp.float32),
                       jax.ShapeDtypeStruct((n_split * SUBLANES, kout_l),
                                            jnp.float32)),
            grid=(n_split, tiles_per_split),
            in_specs=[pl.BlockSpec(
                          (mt, kin_l),
                          lambda c, i, t=tiles_per_split: (c * t + i, 0)),
                      pl.BlockSpec((kin_l, kout_l), lambda c, i: (0, 0))],
            out_specs=(pl.BlockSpec((SUBLANES, kout_l), lambda c, i: (c, 0)),
                       pl.BlockSpec((SUBLANES, kout_l), lambda c, i: (c, 0))),
            compiler_params=pltpu.CompilerParams(
                dimension_semantics=("parallel", "arbitrary")),
            cost_estimate=pl.CostEstimate(
                flops=flops, transcendentals=0,
                bytes_accessed=4 * m_rows_pad * kin_l + 2 * kin_l * kout_l),
        )(x_lane, w_big)

        def unpack(v):  # (kout_l,) lane sums -> (k_out,) per-channel sums
            if packed:
                return v.reshape(g, k_out).sum(axis=0)
            return v[:k_out]

        mean_z = unpack(jnp.sum(sums, axis=0)) / m
        var_z = jnp.maximum(unpack(jnp.sum(sqs, axis=0)) / m - mean_z * mean_z,
                            0.0)
        inv_std = jax.lax.rsqrt(var_z + BN_EPS)
        scale_c = params["gamma"] * inv_std
        shift_c = params["beta"] - scale_c * mean_z   # Linear bias cancels in BN
    else:
        scale_c = jnp.ones((k_out,), jnp.float32)
        shift_c = params["b"]

    scale_l, shift_l = lane(scale_c), lane(shift_c)

    # ---- pass 2: recompute z per tile, folded BN affine + ReLU + residual.
    out_lane = pl.pallas_call(
        functools.partial(_linear_affine_relu_kernel, residual=residual),
        out_shape=jax.ShapeDtypeStruct((m_rows_pad, kout_l), jnp.float32),
        grid=(n_tiles,),
        in_specs=[pl.BlockSpec((mt, kin_l), lambda i: (i, 0)),
                  pl.BlockSpec((kin_l, kout_l), lambda i: (0, 0)),
                  pl.BlockSpec((1, kout_l), lambda i: (0, 0)),
                  pl.BlockSpec((1, kout_l), lambda i: (0, 0))],
        out_specs=pl.BlockSpec((mt, kout_l), lambda i: (i, 0)),
        compiler_params=pltpu.CompilerParams(
            dimension_semantics=("parallel",)),
        cost_estimate=pl.CostEstimate(
            flops=flops, transcendentals=0,
            bytes_accessed=4 * m_rows_pad * (kin_l + kout_l)
                           + 2 * kin_l * kout_l),
    )(x_lane, w_big, scale_l, shift_l)

    if packed:
        out2d = out_lane.reshape(m_rows_pad * g, k_out)[:m]
    else:
        out2d = out_lane[:m, :k_out]
    return out2d.reshape(*lead, k_out)


# TODO(synk): BatchNorm1d's running_mean/var buffer updates are a training-time
# side effect with no returned value; only the batch-stat forward is computed.

if __name__ == "__main__":
    # FCLayer(k_in=32) -> k_out=32, residual=True, use_bn=True
    B, L, K_IN = 2, 64, 32
    K_OUT = K_IN

    key = jax.random.PRNGKey(0)
    kx, kw, kb = jax.random.split(key, 3)

    x = jax.random.normal(kx, (B, L, K_IN), dtype=jnp.float32)

    bound = 1.0 / (K_IN ** 0.5)   # nn.Linear default init bound
    w = jax.random.uniform(kw, (K_OUT, K_IN), jnp.float32, -bound, bound)
    b = jax.random.uniform(kb, (K_OUT,), jnp.float32, -bound, bound)
    gamma = jnp.ones((K_OUT,), jnp.float32)   # BatchNorm1d default affine
    beta = jnp.zeros((K_OUT,), jnp.float32)

    params = prepare_fc_params(w, b, gamma, beta, use_bn=True)
    # Small m_tile so the demo exercises the split ("parallel") stats
    # accumulation and the pipelined grid (128 orig rows -> 32 packed rows,
    # 4 tiles, 2 splits x 2 tiles).
    out = fc_layer_apply(x, params, m_tile=8)
    jax.block_until_ready(out)

    # Pure-JAX reference with the same bf16-operand / f32-accumulate matmul.
    x2d = x.reshape(-1, K_IN)
    z = jnp.dot(x2d.astype(jnp.bfloat16), w.T.astype(jnp.bfloat16),
                preferred_element_type=jnp.float32)
    y = z + b
    mean = y.mean(axis=0, keepdims=True)
    var = ((y - mean) ** 2).mean(axis=0, keepdims=True)
    y = gamma * (y - mean) / jnp.sqrt(var + BN_EPS) + beta
    y = jnp.maximum(y, 0.0) + x2d
    ref = y.reshape(B, L, K_OUT)
    assert jnp.allclose(out, ref, atol=2e-4, rtol=2e-4), \
        float(jnp.max(jnp.abs(out - ref)))

    # Second config: k_out != k_in (no residual, padded-lane path), no BN.
    kw2, kb2 = jax.random.split(kw)
    K2 = 48
    w2 = jax.random.uniform(kw2, (K2, K_IN), jnp.float32, -bound, bound)
    b2 = jax.random.uniform(kb2, (K2,), jnp.float32, -bound, bound)
    p2 = prepare_fc_params(w2, b2, use_bn=False)
    out2 = fc_layer_apply(x, p2, m_tile=16)
    jax.block_until_ready(out2)
    z2 = jnp.dot(x2d.astype(jnp.bfloat16), w2.T.astype(jnp.bfloat16),
                 preferred_element_type=jnp.float32)
    ref2 = jnp.maximum(z2 + b2, 0.0).reshape(B, L, K2)
    assert jnp.allclose(out2, ref2, atol=2e-4, rtol=2e-4), \
        float(jnp.max(jnp.abs(out2 - ref2)))

    print("KERNEL_OK")
</pallas_src>

<mosaic_0001>
module attributes {stable_mosaic.version = 11 : i64} {
  func.func @_linear_stats_kernel(%arg0: i32, %arg1: i32, %arg2: memref<8x128xf32, #tpu.memory_space<vmem>>, %arg3: memref<128x128xbf16, #tpu.memory_space<vmem>>, %arg4: memref<8x128xf32, #tpu.memory_space<vmem>>, %arg5: memref<8x128xf32, #tpu.memory_space<vmem>>) attributes {dimension_semantics = [#tpu.dimension_semantics<parallel>, #tpu.dimension_semantics<arbitrary>], iteration_bounds = array<i64: 2, 2>, scalar_prefetch = 0 : i64, scratch_operands = 0 : i64, tpu.core_type = #tpu.core_type<tc>, window_params = [{transform_indices = @transform_0, window_bounds = array<i64: 8, 128>}, {pipeline_mode = #tpu.pipeline_mode<synchronous>, transform_indices = @transform_1, window_bounds = array<i64: 128, 128>}, {transform_indices = @transform_2, window_bounds = array<i64: 8, 128>}, {transform_indices = @transform_3, window_bounds = array<i64: 8, 128>}]} {
    %c0_i32 = arith.constant 0 : i32
    %0 = arith.cmpi eq, %arg1, %c0_i32 : i32
    %1 = arith.extui %0 : i1 to i32
    %c0_i32_0 = arith.constant 0 : i32
    %2 = arith.cmpi ne, %1, %c0_i32_0 : i32
    scf.if %2 {
      %cst_14 = arith.constant 0.000000e+00 : f32
      %17 = vector.broadcast %cst_14 : f32 to vector<8x128xf32>
      %c0_15 = arith.constant 0 : index
      %c0_16 = arith.constant 0 : index
      %18 = vector.load %arg4[%c0_15, %c0_16] : memref<8x128xf32, #tpu.memory_space<vmem>>, vector<8x128xf32>
      tpu.vector_store %arg4[%c0_15, %c0_16], %17 {strides = array<i32>} : memref<8x128xf32, #tpu.memory_space<vmem>>, vector<8x128xf32>,
      %cst_17 = arith.constant 0.000000e+00 : f32
      %19 = vector.broadcast %cst_17 : f32 to vector<8x128xf32>
      %c0_18 = arith.constant 0 : index
      %c0_19 = arith.constant 0 : index
      %20 = vector.load %arg5[%c0_18, %c0_19] : memref<8x128xf32, #tpu.memory_space<vmem>>, vector<8x128xf32>
      tpu.vector_store %arg5[%c0_18, %c0_19], %19 {strides = array<i32>} : memref<8x128xf32, #tpu.memory_space<vmem>>, vector<8x128xf32>,
    } else {
    }
    %c0 = arith.constant 0 : index
    %c0_1 = arith.constant 0 : index
    %3 = vector.load %arg2[%c0, %c0_1] : memref<8x128xf32, #tpu.memory_space<vmem>>, vector<8x128xf32>
    %4 = arith.truncf %3 : vector<8x128xf32> to vector<8x128xbf16>
    %c0_2 = arith.constant 0 : index
    %c0_3 = arith.constant 0 : index
    %5 = vector.load %arg3[%c0_2, %c0_3] : memref<128x128xbf16, #tpu.memory_space<vmem>>, vector<128x128xbf16>
    %cst = arith.constant dense<0.000000e+00> : vector<8x128xf32>
    %6 = tpu.matmul %4, %5, %cst {dimension_numbers = #tpu.dot_dimension_numbers<[1], [0], [0], [1], [0, 0, 1, 1], [], []>} : vector<8x128xbf16>, vector<128x128xbf16>, vector<8x128xf32> -> vector<8x128xf32>
    %7 = vector.shape_cast %6 : vector<8x128xf32> to vector<1x8x128xf32>
    %c0_4 = arith.constant 0 : index
    %c0_5 = arith.constant 0 : index
    %8 = vector.load %arg4[%c0_4, %c0_5] : memref<8x128xf32, #tpu.memory_space<vmem>>, vector<8x128xf32>
    %cst_6 = arith.constant dense<0.000000e+00> : vector<8x128xf32>
    %9 = vector.multi_reduction <add>, %7, %cst_6 [0] : vector<1x8x128xf32> to vector<8x128xf32>
    %10 = arith.addf %8, %9 : vector<8x128xf32>
    %c0_7 = arith.constant 0 : index
    %c0_8 = arith.constant 0 : index
    %11 = vector.load %arg4[%c0_7, %c0_8] : memref<8x128xf32, #tpu.memory_space<vmem>>, vector<8x128xf32>
    tpu.vector_store %arg4[%c0_7, %c0_8], %10 {strides = array<i32>} : memref<8x128xf32, #tpu.memory_space<vmem>>, vector<8x128xf32>,
    %c0_9 = arith.constant 0 : index
    %c0_10 = arith.constant 0 : index
    %12 = vector.load %arg5[%c0_9, %c0_10] : memref<8x128xf32, #tpu.memory_space<vmem>>, vector<8x128xf32>
    %13 = arith.mulf %7, %7 : vector<1x8x128xf32>
    %cst_11 = arith.constant dense<0.000000e+00> : vector<8x128xf32>
    %14 = vector.multi_reduction <add>, %13, %cst_11 [0] : vector<1x8x128xf32> to vector<8x128xf32>
    %15 = arith.addf %12, %14 : vector<8x128xf32>
    %c0_12 = arith.constant 0 : index
    %c0_13 = arith.constant 0 : index
    %16 = vector.load %arg5[%c0_12, %c0_13] : memref<8x128xf32, #tpu.memory_space<vmem>>, vector<8x128xf32>
    tpu.vector_store %arg5[%c0_12, %c0_13], %15 {strides = array<i32>} : memref<8x128xf32, #tpu.memory_space<vmem>>, vector<8x128xf32>,
    return
  }
  func.func @transform_0(%arg0: i32, %arg1: i32) -> (i32, i32) {
    %c2_i32 = arith.constant 2 : i32
    %0 = arith.muli %arg0, %c2_i32 : i32
    %1 = arith.addi %0, %arg1 : i32
    %c0_i32 = arith.constant 0 : i32
    %c0_i32_0 = arith.constant 0 : i32
    return %1, %c0_i32 : i32, i32
  }
  func.func @transform_1(%arg0: i32, %arg1: i32) -> (i32, i32) {
    %c0_i32 = arith.constant 0 : i32
    %c0_i32_0 = arith.constant 0 : i32
    %c0_i32_1 = arith.constant 0 : i32
    return %c0_i32, %c0_i32_0 : i32, i32
  }
  func.func @transform_2(%arg0: i32, %arg1: i32) -> (i32, i32) {
    %c0_i32 = arith.constant 0 : i32
    %c0_i32_0 = arith.constant 0 : i32
    return %arg0, %c0_i32 : i32, i32
  }
  func.func @transform_3(%arg0: i32, %arg1: i32) -> (i32, i32) {
    %c0_i32 = arith.constant 0 : i32
    %c0_i32_0 = arith.constant 0 : i32
    return %arg0, %c0_i32 : i32, i32
  }
}

</mosaic_0001>

<bundles_post_ra>
// kernel: tpu_custom_call.1
= control target key start
LH: loop header
LB: loop body
LE: loop exit
PB: predicated region body
PF: predicated region fallthrough
CT: control target
= control target key end

     0   :  { %s1156_s0 = inlined_call_operand.hbm [shape: f32[32,128], index: 0, kind: input, shape index: {}]   ;;  %s1157_s1 = inlined_call_operand.hbm [shape: bf16[128,128], index: 1, kind: input, shape index: {}]   ;;  %s1158_s2 = inlined_call_operand.hbm [shape: f32[16,128], index: 2, kind: output, shape index: {0}]   ;;  %s1159_s3 = inlined_call_operand.hbm [shape: f32[16,128], index: 3, kind: output, shape index: {1}]  }
   0x1   :  { %1166 = sst [smem:[#allocation18_spill]] %s1157_s1 }
   0x2   :  { %9 = vsyncpa [#allocation3], 0 }
   0x3   :  { %11 = vsyncpa [#allocation3 + $0x1], 0 }
   0x4   :  { %12 = vsyncpa [#allocation6], 0 }
   0x5   :  { %13 = vsyncpa [#allocation4], 0 }
   0x6   :  { %15 = vsyncpa [#allocation4 + $0x1], 0 }
   0x7   :  { %16 = vsyncpa [#allocation9], 0 }
   0x8   :  { %18 = vsyncpa [#allocation9 + $0x1], 0  ;;  %s918_s12 = smov 0   ;;  %s920_s13 = smov 0  }
   0x9   :  { %s922_s14 = smov 0   ;;  %s924_s15 = smov 0  }
   0xa   :  { %s926_s16 = smov 0   ;;  %s928_s17 = smov 0  }
   0xb   :  { %s930_s18 = smov 0   ;;  %s932_s19 = smov 0  }
   0xc   :  { %s934_s20 = smov 0   ;;  %s936_s21 = smov 0  }
   0xd   :  { %s938_s22 = smov 0  }
   0xe LB: > { %1167 = sst [smem:[#allocation14_spill]] %s884_s20  ;;  %s491_s23 = sadd.s32 4294967295, %s892_s22   ;;  %s892_s22 = sphi %s938_s22, %s24_s22   ;;  %s888_s21 = sphi %s936_s21, %s1182_s21   ;;  %s884_s20 = sphi %s934_s20, %s1181_s20   ;;  %s880_s19 = sphi %s932_s19, %s1180_s19   ;;  %s876_s18 = sphi %s930_s18, %s1179_s18   ;;  %s872_s17 = sphi %s928_s17, %s1188_s17   ;;  %s868_s16 = sphi %s926_s16, %s1187_s16   ;;  %s864_s15 = sphi %s924_s15, %s1186_s15   ;;  %s860_s14 = sphi %s922_s14, %s1185_s14   ;;  %s856_s13 = sphi %s920_s13, %s1184_s13   ;;  %s852_s12 = sphi %s918_s12, %s1183_s12  }
   0xf   : > { %1168 = sst [smem:[#allocation15_spill]] %s888_s21  ;;  %p495_p0 = scmp.ge.s32.totalorder %s892_s22, 1 }
  0x10   : > { %p975_p1 = scmp.eq.s32.totalorder %s491_s23, 0  ;;  %p144_p2 = scmp.lt.s32.totalorder %s892_s22, 5 }
  0x11   : > { %s1170_s1 = sld [smem:[#allocation18_spill]]  ;;  %p983_p3 = scmp.eq.s32.totalorder %s491_s23, 3 }
  0x12   : > { %s1169_s24 = scalar_select %p975_p1, 1, 0 }
  0x13   : > { %p987_p4 = pnand %p495_p0, %p144_p2  ;;  %s894_s30 = smov [#allocation5]  }
  0x14   : > { %s157_s4 = sshll.u32 %s894_s30, 4  ;;  %s895_s5 = smov 64   ;;  %s158_s4 = int_to_ptr.vmem [resolvable:$true] %s157_s4 }
  0x15   : > { %p563_p5 = pneg %p987_p4  ;;  %s896_s6 = smov 4  }
  0x16   : > { %s33_s7 = sadd.s32 1, %s884_s20  ;;  %s36_s8 = sadd.s32 1, %s888_s21 }
  0x17   : > { %s155_s27 = sshll.u32 %s1170_s1, 4  ;;  %p564_p6 = pnand %p563_p5, %p975_p1  ;;  %s156_s27 = int_to_ptr.hbm [resolvable:$true] %s155_s27 }
  0x18   : > { %p34_p7 = scmp.ge.s32.totalorder %s33_s7, 2  ;;  %s492_s9 = sadd.s32 4294967294, %s892_s22  }
  0x19   : > { %566 = dma.hbm_to_vmem [thread:$0]  (!%p564_p6), %s156_s27, 1024, %s158_s4, [#allocation6], %s895_s5, %s895_s5, %s896_s6  }
  0x1a   : > { %s493_s10 = sshll.u32 %s888_s21, 1  ;;  %s1190_s7 = smov (%p34_p7, %s33_s7), 0 }
  0x1b   : > { %1173 = sst [smem:[#allocation16_spill]] %s1190_s7  ;;  %s1192_s8 = smov (!%p34_p7, %s36_s8), %s888_s21 }
  0x1c   : > { %s41_s11 = sadd.s32 %s884_s20, %s493_s10  ;;  %s47_s23 = sadd.s32 1, %s872_s17 }
  0x1d   : > { %p38_p8 = scmp.ge.s32.totalorder %s1192_s8, 2  ;;  %p54_p9 = scmp.ne.s32.totalorder %s872_s17, %s868_s16 }
  0x1e   : > { %p55_p10 = scmp.eq.s32.totalorder %s892_s22, 0  ;;  %p60_p11 = scmp.ne.s32.totalorder %s868_s16, %s864_s15 }
  0x1f   : > { %s1194_s8 = smov (%p38_p8, %s1192_s8), 0  ;;  %s94_s26 = sadd.s32 1, %s860_s14 }
  0x20   : > { %1174 = sst [smem:[#allocation17_spill]] %s1194_s8  ;;  %p1013_p12 = por %p975_p1, %p60_p11 }
  0x21   : > { %s494_s27 = sshll.u32 %s1194_s8, 1  ;;  %s91_s30 = ssub.s32 %s888_s21, %s1194_s8 }
  0x22   : > { %s43_s4 = sadd.s32 %s494_s27, %s1190_s7  ;;  %p92_p13 = scmp.eq.s32.totalorder %s91_s30, 0 }
  0x23   : > { %s44_s15 = ssub.s32 %s41_s11, %s43_s4  ;;  %p104_p0 = scmp.ne.s32.totalorder %s860_s14, %s856_s13 }
  0x24   : > { %p45_p2 = scmp.eq.s32.totalorder %s44_s15, 0  ;;  %p110_p5 = scmp.ne.s32.totalorder %s856_s13, %s852_s12 }
  0x25   : > { %s1027_s5 = scalar_select %p92_p13, %s860_s14, %s94_s26  }
  0x26   : > { %s1030_s6 = scalar_select %p45_p2, %s872_s17, %s47_s23  }
  0x27   : > { %p1034_p6 = por %p983_p3, %p104_p0  ;;  %p111_p7 = scmp.eq.s32.totalorder %s492_s9, 3 }
  0x28   : > { %p56_p8 = por %p55_p10, %p54_p9  ;;  %s171_s1 = sand.u32 1, %s872_s17  }
  0x29   : > { %p1044_p11 = por %p111_p7, %p110_p5  ;;  %p579_p1 = scmp.lt.s32.totalorder %s892_s22, 4 }
  0x2a   : > { %s498_s30 = sshll.u32 %s171_s1, 3  ;;  %s500_s26 = sshll.u32 %s41_s11, 3 }
  0x2b   : > { %s181_s28 = scalar_lea.hbm %s1156_s0, %s500_s26  ;;  %s175_s8 = scalar_lea.vmem [#allocation2], %s498_s30 }
  0x2c   : > { %s183_s15 = sshll.u32 %s181_s28, 4  ;;  %s185_s7 = sshll.u32 %s175_s8, 4  ;;  %s184_s15 = int_to_ptr.hbm [resolvable:$true] %s183_s15  ;;  %s186_s7 = int_to_ptr.vmem [resolvable:$true] %s185_s7 }
  0x2d   : > { %p568_p3 = pnand %p579_p1, %p56_p8  ;;  %s172_s9 = scalar_lea.sflag [#allocation3], %s171_s1 }
  0x2e   : > { %194 = sbr.rel (%p987_p4) target bundleno = 241 (0xf1), region = 28  ;;  %s196_s21 = sand.u32 (!%p987_p4), 1, %s868_s16  }
  0x2f   : > { %570 = dma.hbm_to_vmem [thread:$0]  (!%p568_p3), %s184_s15, 128, %s186_s7, %s172_s9  }
  0x30   : > { %s1055_s20 = sshll.u32 (!%p987_p4), %s196_s21, 3  ;;  %s197_s11 = scalar_lea.sflag (!%p987_p4), [#allocation3], %s196_s21 }
  0x31   : > { %s200_s4 = scalar_lea.vmem (!%p987_p4), [#allocation2], %s1055_s20 }
  0x33   : > { %835 = dma.done.wait (%p1013_p12), %s197_s11, 128  }
  0x34   : > { %837 = vsyncadd (%p1013_p12), %s197_s11, 4294967168  ;;  %p1178_p1 = scmp.ne.s32.totalorder %s1169_s24, 0 }
  0x36   : > { %839 = dma.done.wait (%p1178_p1), [#allocation6], 1024  }
  0x37   : > { %841 = vsyncadd (%p1178_p1), [#allocation6], 4294966272  ;;  %s1067_s1 = sand.u32 1, %s856_s13   ;;  %p506_p4 = scmp.ne.s32.totalorder %s876_s18, 0 }
  0x38   : > { %s504_s29 = sshll.u32 %s1067_s1, 3 }
  0x39   : > { %s1070_s7 = scalar_lea.vmem [#allocation7], %s504_s29  ;;  %s1072_s21 = scalar_lea.vmem [#allocation8], %s504_s29 }
  0x3a   : > { %239 = sbr.rel (%p506_p4) target bundleno = 66 (0x42), region = 40 }
  0x3f   : > { %v897_v0 = vmov 0.0  }
  0x40   : > { %240 = vst [vmem:[%s1070_s7] sm:$0xff] %v897_v0 }
  0x41   : > { %241 = vst [vmem:[%s1072_s21] sm:$0xff] %v897_v0 }
  0x42 PF: > { %v552_v1 = vld [vmem:[#allocation5 + $0x38] sm:$0xff]  ;;  %v551_v2 = vld [vmem:[#allocation5 + $0x30] sm:$0xff]  ;;  %v550_v3 = vld [vmem:[#allocation5 + $0x28] sm:$0xff]  ;;  %s541_s18 = sshll.u32 %s880_s19, 3  ;;  %s348_s23 = sshll.u32 %s1070_s7, 4  ;;  %s349_s23 = int_to_ptr.vmem [resolvable:$true] %s348_s23 }
  0x43   : > { %308 = vmatpush.bf16.msra.mxu0 %v552_v1  ;;  %v549_v4 = vld [vmem:[#allocation5 + $0x20] sm:$0xff]  ;;  %v548_v5 = vld [vmem:[#allocation5 + $0x18] sm:$0xff]  ;;  %v547_v6 = vld [vmem:[#allocation5 + $0x10] sm:$0xff]  ;;  %s346_s8 = scalar_lea.hbm %s1158_s2, %s541_s18  ;;  %s360_s26 = scalar_lea.hbm %s1159_s3, %s541_s18 }
  0x44   : > { %v546_v7 = vld [vmem:[#allocation5 + $0x8] sm:$0xff]  ;;  %v545_v8 = vld [vmem:[#allocation5] sm:$0xff]  ;;  %v242_v9 = vld [vmem:[%s200_s4] sm:$0xff]  ;;  %s350_s28 = sshll.u32 %s346_s8, 4  ;;  %s362_s15 = sshll.u32 %s1072_s21, 4  ;;  %s351_s28 = int_to_ptr.hbm [resolvable:$true] %s350_s28  ;;  %s1089_s15 = int_to_ptr.vmem [resolvable:$true] %s362_s15 }
  0x45   : > { %v243_v10 = vpack.c.bf16 %v242_v9, %v242_v9  ;;  %s364_s9 = sshll.u32 %s360_s26, 4  ;;  %s331_s19 = scalar_lea.sflag [#allocation4], %s1067_s1  ;;  %s1091_s9 = int_to_ptr.hbm [resolvable:$true] %s364_s9 }
  0x46   : > { %s748_s11 = sshra.s32 %s351_s28, 4  ;;  %s754_s20 = scalar_lea.hbm %s1158_s2, 16  ;;  %s749_s11 = int_to_ptr.hbm [resolvable:$true] %s748_s11 }
  0x47   : > { %309 = vmatpush.bf16.msra.mxu0 %v551_v2  ;;  %v321_v11 = vld [vmem:[%s1070_s7] sm:$0xff]  ;;  %s750_s4 = scalar_lea.hbm %s749_s11, 8  ;;  %p755_p13 = scmp.lt.s32.totalorder %s749_s11, %s1158_s2 }
  0x48   : > { %v325_v13 = vld [vmem:[%s1072_s21] sm:$0xff]  ;;  %p751_p9 = scmp.ne.s32.totalorder %s749_s11, %s750_s4  ;;  %p756_p0 = scmp.lt.s32.totalorder %s754_s20, %s750_s4 }
  0x4a   : > { %p752_p10 = pnand %p751_p9, %p1034_p6  ;;  %p757_p2 = por %p756_p0, %p755_p13 }
  0x4b   : > { %310 = vmatpush.bf16.msra.mxu0 %v550_v3 }
  0x4c   : > { %p753_p12 = pneg %p752_p10 }
  0x4e   : > { %p758_p5 = pnand %p757_p2, %p753_p12 }
  0x4f   : > { %311 = vmatpush.bf16.msra.mxu0 %v549_v4 }
  0x53   : > { %312 = vmatpush.bf16.msra.mxu0 %v548_v5 }
  0x57   : > { %313 = vmatpush.bf16.msra.mxu0 %v547_v6 }
  0x5b   : > { %314 = vmatpush.bf16.msra.mxu0 %v546_v7 }
  0x5f   : > { %315 = vmatpush.bf16.msra.mxu0 %v545_v8 }
  0x62   : > { %316 = vmatmul.bf16.vlgmr.msra.gmra.mxu0 %v243_v10 }
  0xdf   : > { %v317_v12 = vpop.f32.mrf.mxu0 }
  0xe0   : > { %v323_v14 = vadd.f32 %v321_v11, %v317_v12  ;;  %v326_v15 = vmul.f32 %v317_v12, %v317_v12 }
  0xe2   : > { %v328_v16 = vadd.f32 %v326_v15, %v325_v13  ;;  %324 = vst [vmem:[%s1070_s7] sm:$0xff] %v323_v14 }
  0xe3   : > { %761 = shalt.err (!%p758_p5)
}
  0xe4   : > { %559 = dma.vmem_to_hbm [thread:$0]  (%p1034_p6), %s349_s23, 128, %s351_s28, %s331_s19   ;;  %329 = vst [vmem:[%s1072_s21] sm:$0xff] %v328_v16 }
  0xe5   : > { %s336_s7 = scalar_lea.sflag [#allocation9], %s1067_s1  ;;  %s776_s25 = sshra.s32 %s1091_s9, 4  ;;  %s777_s25 = int_to_ptr.hbm [resolvable:$true] %s776_s25 }
  0xe6   : > { %s778_s30 = scalar_lea.hbm %s777_s25, 8  ;;  %s782_s4 = scalar_lea.hbm %s1159_s3, 16 }
  0xe7   : > { %p779_p7 = scmp.ne.s32.totalorder %s777_s25, %s778_s30  ;;  %p783_p1 = scmp.lt.s32.totalorder %s777_s25, %s1159_s3 }
  0xe8   : > { %p784_p4 = scmp.lt.s32.totalorder %s782_s4, %s778_s30 }
  0xe9   : > { %p780_p8 = pnand %p779_p7, %p1034_p6 }
  0xea   : > { %p785_p9 = por %p784_p4, %p783_p1 }
  0xeb   : > { %p781_p3 = pneg %p780_p8 }
  0xed   : > { %p786_p10 = pnand %p785_p9, %p781_p3 }
  0xef   : > { %789 = shalt.err (!%p786_p10)
}
  0xf0   : > { %560 = dma.vmem_to_hbm [thread:$0]  (%p1034_p6), %s1089_s15, 128, %s1091_s9, %s336_s7   ;;  %v319_v17 = vpop.f32.mrf.mxu0 }
  0xf1 PF: > { %p581_p12 = scmp.ge.s32.totalorder %s892_s22, 2  ;;  %s376_s1 = sand.u32 1, %s852_s12  }
  0xf2   : > { %s377_s21 = scalar_lea.sflag [#allocation4], %s376_s1 }
  0xf3   : > { %p572_p13 = pnand %p581_p12, %p1044_p11 }
  0xf5   : > { %p573_p0 = pneg %p572_p13 }
  0xf7   : > { %843 = dma.done.wait (%p573_p0), %s377_s21, 128  }
  0xf8   : > { %845 = vsyncadd (%p573_p0), %s377_s21, 4294967168  ;;  %s387_s23 = scalar_lea.sflag [#allocation9], %s376_s1 }
  0xf9   : > { %847 = dma.done.wait (%p573_p0), %s387_s23, 128  }
  0xfa   : > { %849 = vsyncadd (%p573_p0), %s387_s23, 4294967168  ;;  %s24_s22 = sadd.s32 1, %s892_s22   ;;  %s1179_s18 = sld [smem:[#allocation14_spill]] }
  0xfb   : > { %p21_p2 = scmp.ge.s32.totalorder %s24_s22, 6   ;;  %s1180_s19 = sld [smem:[#allocation15_spill]] }
  0xfc   : > { %s1181_s20 = sld [smem:[#allocation16_spill]]  ;;  %s1183_s12 = smov %s856_s13 }
  0xfd   : > { %s1182_s21 = sld [smem:[#allocation17_spill]]  ;;  %s1184_s13 = smov %s860_s14 }
  0xfe   : > { %s1185_s14 = smov %s1027_s5  ;;  %s1186_s15 = smov %s868_s16 }
  0xff   : > { %s1187_s16 = smov %s872_s17  ;;  %s1188_s17 = smov %s1030_s6 }
 0x100   :  { %23 = sbr.rel (!%p21_p2) target bundleno = 14 (0xe), region = 98 }
 0x105   :  { %393 = vsyncpa [#allocation3], 1 }
 0x106   :  { %395 = vsyncpa [#allocation3 + $0x1], 1 }
 0x107   :  { %396 = vsyncpa [#allocation6], 1 }
 0x108   :  { %397 = vsyncpa [#allocation4], 1 }
 0x109   :  { %399 = vsyncpa [#allocation4 + $0x1], 1 }
 0x10a   :  { %400 = vsyncpa [#allocation9], 1 }
 0x10b   :  { %402 = vsyncpa [#allocation9 + $0x1], 1 }

</bundles_post_ra>
